<compile_context>
chip_gen: v5e
topology: v5e:2x2
jax: 0.10.0
libtpu: 0.0.40
codegen_flags: <defaults>
</compile_context>

<pallas_src>
import jax
import jax.numpy as jnp
from jax.experimental import pallas as pl
from jax.experimental.pallas import tpu as pltpu


# ----------------------------------------------------------------------------
# Encoder head: out = relu(linear(pooled_resnet_features))
# ----------------------------------------------------------------------------
def encoder_head_kernel(x_ref, w_ref, b_ref, o_ref):
    o_ref[...] = jnp.maximum(
        jnp.dot(x_ref[...], w_ref[...], preferred_element_type=jnp.float32)
        + b_ref[...], 0.0)


def encoder_forward(enc_params, pooled):
    """pooled: (B, 2048) f32 — stands in for resnet(images).reshape(B, -1)."""
    B = pooled.shape[0]
    E = enc_params["lin_w"].shape[0]
    wT = enc_params["lin_w"].T.astype(jnp.float32)          # (2048, E)
    b = enc_params["lin_b"].reshape(1, E).astype(jnp.float32)
    vmem = pl.BlockSpec(memory_space=pltpu.MemorySpace.VMEM)
    return pl.pallas_call(
        encoder_head_kernel,
        out_shape=jax.ShapeDtypeStruct((B, E), jnp.float32),
        in_specs=[vmem, vmem, vmem],
        out_specs=vmem,
    )(pooled.astype(jnp.float32), wT, b)


# ----------------------------------------------------------------------------
# DecoderRNN forward kernel
# ----------------------------------------------------------------------------
def make_decoder_kernel(T, B, H):
    N = T * B

    def kernel(emb_ref, feat_ref, wih0e_ref, wih0f_ref, b0_ref,
               whh0_ref, w1_ref, b1_ref, wfc_ref, bfc_ref,
               out_ref, gx_ref, htop_ref):
        """
        emb_ref  : (N, E)    bf16  flattened caption embeddings, s = t*B + b
        feat_ref : (B, E)    f32   encoder features (repeat over t)
        wih0e_ref: (E, 4H)   bf16  layer-0 input weights, embedding half (T)
        wih0f_ref: (E, 4H)   f32   layer-0 input weights, feature half (T)
        b0_ref   : (1, 4H)   f32   layer-0 combined bias (b_ih + b_hh)
        whh0_ref : (H, 4H)   f32   layer-0 recurrent weights (T)
        w1_ref   : (2H, 4H)  f32   layer-1 fused [input; recurrent] weights (T)
        b1_ref   : (1, 4H)   f32   layer-1 combined bias
        wfc_ref  : (H, Vp)   bf16  fc_out weight (T), vocab padded to 128
        bfc_ref  : (1, Vp)   f32   fc_out bias (padded)
        out_ref  : (N, Vp)   f32   logits per step (lane-dense)
        gx_ref   : (N, 4H)   f32   scratch: layer-0 input projections
        htop_ref : (N, H)    f32   scratch: stacked top-layer hidden states
        """
        # ---- batched precompute: layer-0 input projection (bf16 MXU) ----
        gx_ref[...] = (jnp.dot(emb_ref[...], wih0e_ref[...],
                               preferred_element_type=jnp.float32)
                       + b0_ref[...])
        # Feature half is identical across t: project once (B rows), add to
        # every time block.  One-time work, off the recurrence critical path.
        fx = jnp.dot(feat_ref[...], wih0f_ref[...],
                     preferred_element_type=jnp.float32)          # (B, 4H)
        for t in range(T):                                        # static slices
            gx_ref[t * B:(t + 1) * B, :] = gx_ref[t * B:(t + 1) * B, :] + fx

        b1v = b1_ref[...]                                         # hoisted load

        def step(s, carry):
            h0, c0, h1, c1 = carry                # (1, H) each, live in vregs

            # ---- layer 0 cell (PyTorch gate order i, f, g, o) ----
            g0 = gx_ref[pl.ds(s, 1), :] + jnp.dot(
                h0, whh0_ref[...], preferred_element_type=jnp.float32)
            sg0 = jax.nn.sigmoid(g0)              # full-width (1, 4H) EUP push
            tg0 = jnp.tanh(g0)                    # full-width (1, 4H) EUP push
            i0 = sg0[:, 0 * H:1 * H]
            f0 = sg0[:, 1 * H:2 * H]
            gc0 = tg0[:, 2 * H:3 * H]
            o0 = sg0[:, 3 * H:4 * H]
            c0n = f0 * c0 + i0 * gc0
            h0n = o0 * jnp.tanh(c0n)

            # ---- layer 1 cell: fused input+recurrent matmul (one MXU push) --
            x1 = jnp.concatenate([h0n, h1], axis=-1)              # (1, 2H)
            g1 = jnp.dot(x1, w1_ref[...],
                         preferred_element_type=jnp.float32) + b1v
            sg1 = jax.nn.sigmoid(g1)
            tg1 = jnp.tanh(g1)
            i1 = sg1[:, 0 * H:1 * H]
            f1 = sg1[:, 1 * H:2 * H]
            gc1 = tg1[:, 2 * H:3 * H]
            o1 = sg1[:, 3 * H:4 * H]
            c1n = f1 * c1 + i1 * gc1
            h1n = o1 * jnp.tanh(c1n)

            htop_ref[pl.ds(s, 1), :] = h1n
            return (h0n, c0n, h1n, c1n)

        z = jnp.zeros((1, H), jnp.float32)        # nn.LSTM default hx = zeros
        jax.lax.fori_loop(0, N, step, (z, z, z, z),
                          unroll=True if N <= 64 else 8)

        # ---- fc_out over all stacked hidden states (bf16 MXU, f32 acc) ----
        out_ref[...] = (jnp.dot(htop_ref[...].astype(jnp.bfloat16), wfc_ref[...],
                                preferred_element_type=jnp.float32)
                        + bfc_ref[...])

    return kernel


def decoder_rnn_forward(params, features, captions):
    """JAX wrapper: embedding gather + layout glue + pallas_call."""
    B, Tcap = captions.shape
    padded = jnp.concatenate(
        [jnp.zeros((B, 1), jnp.int32), captions.astype(jnp.int32)], axis=1)
    T = padded.shape[1] - 1  # == Tcap (loop range in the PyTorch forward)

    cap_emb = params["embed"][padded[:, :T]]                    # (B, T, E)
    E = cap_emb.shape[-1]
    H = params["w_hh_l0"].shape[1]
    V = params["fc_w"].shape[0]
    N = T * B
    Vpad = pl.cdiv(V, 128) * 128

    # Embedding stream in (t-major, b-minor) order: s = t*B + b.
    emb_flat = (jnp.transpose(cap_emb, (1, 0, 2))
                .reshape(N, E).astype(jnp.bfloat16))
    feats = features.astype(jnp.float32)

    # Weight prep: split layer-0 input weights into [emb | feature] halves,
    # fuse layer-1's two matrices, pad fc to lane-dense vocab width.
    wih0 = params["w_ih_l0"]                                    # (4H, 2E)
    wih0e = wih0[:, :E].T.astype(jnp.bfloat16)                  # (E, 4H)
    wih0f = wih0[:, E:].T.astype(jnp.float32)                   # (E, 4H)
    b0 = (params["b_ih_l0"] + params["b_hh_l0"]).reshape(1, 4 * H)
    whh0T = params["w_hh_l0"].T.astype(jnp.float32)             # (H, 4H)
    w1cat = jnp.concatenate(
        [params["w_ih_l1"].T, params["w_hh_l1"].T], axis=0
    ).astype(jnp.float32)                                       # (2H, 4H)
    b1 = (params["b_ih_l1"] + params["b_hh_l1"]).reshape(1, 4 * H)
    wfcT = jnp.zeros((H, Vpad), jnp.bfloat16).at[:, :V].set(
        params["fc_w"].T.astype(jnp.bfloat16))                  # (H, Vpad)
    bfc = jnp.zeros((1, Vpad), jnp.float32).at[:, :V].set(params["fc_b"])

    # Explicit VMEM budget (everything is resident; generous headroom).
    f32b, bf16b = 4, 2
    resident = (N * E * bf16b + B * E * f32b
                + E * 4 * H * (bf16b + f32b) + 2 * (4 * H) * f32b
                + H * 4 * H * f32b + 2 * H * 4 * H * f32b
                + H * Vpad * bf16b + Vpad * f32b
                + N * Vpad * f32b + N * 4 * H * f32b + N * H * f32b)
    vmem_limit = min(100 * 1024 * 1024,
                     max(32 * 1024 * 1024, 2 * resident + (8 << 20)))

    vmem = pl.BlockSpec(memory_space=pltpu.MemorySpace.VMEM)
    out_flat = pl.pallas_call(
        make_decoder_kernel(T, B, H),
        out_shape=jax.ShapeDtypeStruct((N, Vpad), jnp.float32),
        in_specs=[vmem] * 10,
        out_specs=vmem,
        scratch_shapes=[
            pltpu.VMEM((N, 4 * H), jnp.float32),   # gx_ref
            pltpu.VMEM((N, H), jnp.float32),       # htop_ref
        ],
        compiler_params=pltpu.CompilerParams(vmem_limit_bytes=int(vmem_limit)),
    )(emb_flat, feats, wih0e, wih0f, b0, whh0T, w1cat, b1, wfcT, bfc)

    # step s = t*B + b  ->  outputs[b, t, :]; drop vocab padding.
    return jnp.transpose(out_flat.reshape(T, B, Vpad), (1, 0, 2))[:, :, :V]


# ----------------------------------------------------------------------------
# Pure-JAX references
# ----------------------------------------------------------------------------
def ref_encoder(enc_params, pooled):
    return jnp.maximum(pooled @ enc_params["lin_w"].T + enc_params["lin_b"], 0.0)


def ref_decoder(params, features, captions):
    """Mirrors the PyTorch forward, incl. the 2-D-input LSTM quirk."""
    B, Tcap = captions.shape
    padded = jnp.concatenate(
        [jnp.zeros((B, 1), jnp.int32), captions.astype(jnp.int32)], axis=1)
    T = Tcap
    cap_emb = params["embed"][padded[:, :T]]
    H = params["w_hh_l0"].shape[1]

    def lstm_cell(xv, h, c, wih, whh, bih, bhh):
        g = xv @ wih.T + bih + h @ whh.T + bhh
        i, f, gg, o = jnp.split(g, 4)
        c = jax.nn.sigmoid(f) * c + jax.nn.sigmoid(i) * jnp.tanh(gg)
        h = jax.nn.sigmoid(o) * jnp.tanh(c)
        return h, c

    h0 = jnp.zeros((H,)); c0 = jnp.zeros((H,))
    h1 = jnp.zeros((H,)); c1 = jnp.zeros((H,))
    outputs = []
    for t in range(T):
        outs_t = []
        for b in range(B):
            xv = jnp.concatenate([cap_emb[b, t], features[b]])
            h0, c0 = lstm_cell(xv, h0, c0, params["w_ih_l0"], params["w_hh_l0"],
                               params["b_ih_l0"], params["b_hh_l0"])
            h1, c1 = lstm_cell(h0, h1, c1, params["w_ih_l1"], params["w_hh_l1"],
                               params["b_ih_l1"], params["b_hh_l1"])
            outs_t.append(h1 @ params["fc_w"].T + params["fc_b"])
        outputs.append(jnp.stack(outs_t))           # (B, V)
    return jnp.stack(outputs, axis=1)               # (B, T, V)


if __name__ == "__main__":
    B, T, E, H, V = 2, 8, 16, 32, 50
    key = jax.random.PRNGKey(0)
    ks = jax.random.split(key, 14)
    s = 0.1
    params = {
        "embed":   jax.random.normal(ks[0], (V, E), jnp.float32) * s,
        "w_ih_l0": jax.random.normal(ks[1], (4 * H, 2 * E), jnp.float32) * s,
        "w_hh_l0": jax.random.normal(ks[2], (4 * H, H), jnp.float32) * s,
        "b_ih_l0": jax.random.normal(ks[3], (4 * H,), jnp.float32) * s,
        "b_hh_l0": jax.random.normal(ks[4], (4 * H,), jnp.float32) * s,
        "w_ih_l1": jax.random.normal(ks[5], (4 * H, H), jnp.float32) * s,
        "w_hh_l1": jax.random.normal(ks[6], (4 * H, H), jnp.float32) * s,
        "b_ih_l1": jax.random.normal(ks[7], (4 * H,), jnp.float32) * s,
        "b_hh_l1": jax.random.normal(ks[8], (4 * H,), jnp.float32) * s,
        "fc_w":    jax.random.normal(ks[9], (V, H), jnp.float32) * s,
        "fc_b":    jax.random.normal(ks[10], (V,), jnp.float32) * s,
    }
    enc_params = {
        "lin_w": jax.random.normal(ks[12], (E, 2048), jnp.float32) * 0.02,
        "lin_b": jax.random.normal(ks[13], (E,), jnp.float32) * 0.02,
    }
    # Stand-in for the (frozen) ResNet50 pooled feature: resnet(images).reshape(B,-1)
    pooled = jax.random.normal(ks[11], (B, 2048), jnp.float32)
    captions = jax.random.randint(jax.random.PRNGKey(1), (B, T), 0, V, jnp.int32)

    # Encoder head kernel
    features = jax.block_until_ready(encoder_forward(enc_params, pooled))
    assert features.shape == (B, E) and features.dtype == jnp.float32
    feat_ref = jax.block_until_ready(ref_encoder(enc_params, pooled))
    assert float(jnp.max(jnp.abs(features - feat_ref))) < 5e-2, "encoder mismatch"

    # Decoder kernel (fed by encoder output)
    out = jax.block_until_ready(decoder_rnn_forward(params, features, captions))
    assert out.shape == (B, T, V) and out.dtype == jnp.float32
    ref = jax.block_until_ready(ref_decoder(params, features, captions))
    assert float(jnp.max(jnp.abs(out - ref))) < 1e-2, "decoder mismatch"

    # TODO(synk): `predict` (greedy/Categorical sampling + idx->word decode) is
    # host-side control flow over a Python Vocabulary and is not implemented.
    print("KERNEL_OK")
</pallas_src>

<mosaic_0001>
module attributes {stable_mosaic.version = 11 : i64} {
  func.func @encoder_head_kernel(%arg0: memref<2x2048xf32, #tpu.memory_space<vmem>>, %arg1: memref<2048x16xf32, #tpu.memory_space<vmem>>, %arg2: memref<1x16xf32, #tpu.memory_space<vmem>>, %arg3: memref<2x16xf32, #tpu.memory_space<vmem>>) attributes {dimension_semantics = [], scalar_prefetch = 0 : i64, scratch_operands = 0 : i64, tpu.core_type = #tpu.core_type<tc>} {
    %c0 = arith.constant 0 : index
    %c0_0 = arith.constant 0 : index
    %0 = vector.load %arg0[%c0, %c0_0] : memref<2x2048xf32, #tpu.memory_space<vmem>>, vector<2x2048xf32>
    %c0_1 = arith.constant 0 : index
    %c0_2 = arith.constant 0 : index
    %1 = vector.load %arg1[%c0_1, %c0_2] : memref<2048x16xf32, #tpu.memory_space<vmem>>, vector<2048x16xf32>
    %cst = arith.constant dense<0.000000e+00> : vector<2x16xf32>
    %2 = tpu.matmul %0, %1, %cst {dimension_numbers = #tpu.dot_dimension_numbers<[1], [0], [0], [1], [0, 0, 1, 1], [], []>} : vector<2x2048xf32>, vector<2048x16xf32>, vector<2x16xf32> -> vector<2x16xf32>
    %c0_3 = arith.constant 0 : index
    %c0_4 = arith.constant 0 : index
    %3 = vector.load %arg2[%c0_3, %c0_4] : memref<1x16xf32, #tpu.memory_space<vmem>>, vector<1x16xf32>
    %4 = vector.broadcast %3 : vector<1x16xf32> to vector<2x16xf32>
    %5 = arith.addf %2, %4 : vector<2x16xf32>
    %cst_5 = arith.constant 0.000000e+00 : f32
    %6 = vector.broadcast %cst_5 : f32 to vector<2x16xf32>
    %7 = arith.maximumf %5, %6 : vector<2x16xf32>
    %c0_6 = arith.constant 0 : index
    %c0_7 = arith.constant 0 : index
    %8 = vector.load %arg3[%c0_6, %c0_7] : memref<2x16xf32, #tpu.memory_space<vmem>>, vector<2x16xf32>
    tpu.vector_store %arg3[%c0_6, %c0_7], %7 {strides = array<i32>} : memref<2x16xf32, #tpu.memory_space<vmem>>, vector<2x16xf32>,
    return
  }
}

</mosaic_0001>

<bundles_post_ra>
// kernel: tpu_custom_call.1
= control target key start
LH: loop header
LB: loop body
LE: loop exit
PB: predicated region body
PF: predicated region fallthrough
CT: control target
= control target key end

     0   :  { %s1512_s0 = inlined_call_operand.vmem [shape: f32[2,2048], index: 0, kind: input, shape index: {}]   ;;  %s1513_s1 = inlined_call_operand.vmem [shape: f32[2048,16], index: 1, kind: input, shape index: {}]   ;;  %s1514_s2 = inlined_call_operand.vmem [shape: f32[1,16], index: 2, kind: input, shape index: {}]   ;;  %s1515_s3 = inlined_call_operand.hbm [shape: f32[2,16], index: 3, kind: output, shape index: {}]  }
   0x1   :  { %v34_v0 = vld [vmem:[%s1513_s1 + $0x78] sm:$0xff]  ;;  %v33_v2 = vld [vmem:[%s1513_s1 + $0x70] sm:$0xff]  ;;  %v32_v6 = vld [vmem:[%s1513_s1 + $0x68] sm:$0xff] }
   0x2   :  { %v66_v1 = vld [vmem:[%s1513_s1 + $0x178] sm:$0xff]  ;;  %320 = vmatpush.msra.mxu0 %v34_v0  ;;  %v65_v4 = vld [vmem:[%s1513_s1 + $0x170] sm:$0xff]  ;;  %v64_v8 = vld [vmem:[%s1513_s1 + $0x168] sm:$0xff] }
   0x3   :  { %360 = vmatpush.msra.mxu2 %v66_v1  ;;  %v50_v3 = vld [vmem:[%s1513_s1 + $0xf8] sm:$0xff]  ;;  %v49_v7 = vld [vmem:[%s1513_s1 + $0xf0] sm:$0xff]  ;;  %v48_v10 = vld [vmem:[%s1513_s1 + $0xe8] sm:$0xff] }
   0x4   :  { %v82_v5 = vld [vmem:[%s1513_s1 + $0x1f8] sm:$0xff]  ;;  %340 = vmatpush.msra.mxu1 %v50_v3  ;;  %321 = vmatpush.msra.mxu0 %v33_v2  ;;  %v81_v9 = vld [vmem:[%s1513_s1 + $0x1f0] sm:$0xff]  ;;  %v31_v11 = vld [vmem:[%s1513_s1 + $0x60] sm:$0xff] }
   0x5   :  { %380 = vmatpush.msra.mxu3 %v82_v5  ;;  %361 = vmatpush.msra.mxu2 %v65_v4  ;;  %v63_v12 = vld [vmem:[%s1513_s1 + $0x160] sm:$0xff]  ;;  %v80_v13 = vld [vmem:[%s1513_s1 + $0x1e8] sm:$0xff]  ;;  %v30_v16 = vld [vmem:[%s1513_s1 + $0x58] sm:$0xff] }
   0x6   :  { %341 = vmatpush.msra.mxu1 %v49_v7  ;;  %322 = vmatpush.msra.mxu0 %v32_v6  ;;  %v47_v14 = vld [vmem:[%s1513_s1 + $0xe0] sm:$0xff]  ;;  %v62_v17 = vld [vmem:[%s1513_s1 + $0x158] sm:$0xff]  ;;  %v29_v20 = vld [vmem:[%s1513_s1 + $0x50] sm:$0xff] }
   0x7   :  { %381 = vmatpush.msra.mxu3 %v81_v9  ;;  %362 = vmatpush.msra.mxu2 %v64_v8  ;;  %v79_v15 = vld [vmem:[%s1513_s1 + $0x1e0] sm:$0xff]  ;;  %v46_v18 = vld [vmem:[%s1513_s1 + $0xd8] sm:$0xff]  ;;  %v61_v21 = vld [vmem:[%s1513_s1 + $0x150] sm:$0xff] }
   0x8   :  { %342 = vmatpush.msra.mxu1 %v48_v10  ;;  %323 = vmatpush.msra.mxu0 %v31_v11  ;;  %v78_v19 = vld [vmem:[%s1513_s1 + $0x1d8] sm:$0xff]  ;;  %v45_v22 = vld [vmem:[%s1513_s1 + $0xd0] sm:$0xff]  ;;  %v28_v24 = vld [vmem:[%s1513_s1 + $0x48] sm:$0xff] }
   0x9   :  { %382 = vmatpush.msra.mxu3 %v80_v13  ;;  %363 = vmatpush.msra.mxu2 %v63_v12  ;;  %v77_v23 = vld [vmem:[%s1513_s1 + $0x1d0] sm:$0xff]  ;;  %v60_v25 = vld [vmem:[%s1513_s1 + $0x148] sm:$0xff]  ;;  %v27_v28 = vld [vmem:[%s1513_s1 + $0x40] sm:$0xff] }
   0xa   :  { %343 = vmatpush.msra.mxu1 %v47_v14  ;;  %324 = vmatpush.msra.mxu0 %v30_v16  ;;  %v44_v26 = vld [vmem:[%s1513_s1 + $0xc8] sm:$0xff]  ;;  %v59_v29 = vld [vmem:[%s1513_s1 + $0x140] sm:$0xff]  ;;  %v26_v32 = vld [vmem:[%s1513_s1 + $0x38] sm:$0xff] }
   0xb   :  { %383 = vmatpush.msra.mxu3 %v79_v15  ;;  %364 = vmatpush.msra.mxu2 %v62_v17  ;;  %v76_v27 = vld [vmem:[%s1513_s1 + $0x1c8] sm:$0xff]  ;;  %v43_v30 = vld [vmem:[%s1513_s1 + $0xc0] sm:$0xff]  ;;  %v58_v33 = vld [vmem:[%s1513_s1 + $0x138] sm:$0xff] }
   0xc   :  { %344 = vmatpush.msra.mxu1 %v46_v18  ;;  %325 = vmatpush.msra.mxu0 %v29_v20  ;;  %v75_v31 = vld [vmem:[%s1513_s1 + $0x1c0] sm:$0xff]  ;;  %v42_v34 = vld [vmem:[%s1513_s1 + $0xb8] sm:$0xff]  ;;  %v25_v36 = vld [vmem:[%s1513_s1 + $0x30] sm:$0xff] }
   0xd   :  { %384 = vmatpush.msra.mxu3 %v78_v19  ;;  %365 = vmatpush.msra.mxu2 %v61_v21  ;;  %v74_v35 = vld [vmem:[%s1513_s1 + $0x1b8] sm:$0xff]  ;;  %v57_v37 = vld [vmem:[%s1513_s1 + $0x130] sm:$0xff]  ;;  %v24_v40 = vld [vmem:[%s1513_s1 + $0x28] sm:$0xff] }
   0xe   :  { %345 = vmatpush.msra.mxu1 %v45_v22  ;;  %326 = vmatpush.msra.mxu0 %v28_v24  ;;  %v41_v38 = vld [vmem:[%s1513_s1 + $0xb0] sm:$0xff]  ;;  %v56_v41 = vld [vmem:[%s1513_s1 + $0x128] sm:$0xff]  ;;  %v23_v44 = vld [vmem:[%s1513_s1 + $0x20] sm:$0xff] }
   0xf   :  { %385 = vmatpush.msra.mxu3 %v77_v23  ;;  %366 = vmatpush.msra.mxu2 %v60_v25  ;;  %v73_v39 = vld [vmem:[%s1513_s1 + $0x1b0] sm:$0xff]  ;;  %v40_v42 = vld [vmem:[%s1513_s1 + $0xa8] sm:$0xff]  ;;  %v55_v45 = vld [vmem:[%s1513_s1 + $0x120] sm:$0xff] }
  0x10   :  { %346 = vmatpush.msra.mxu1 %v44_v26  ;;  %327 = vmatpush.msra.mxu0 %v27_v28  ;;  %v72_v43 = vld [vmem:[%s1513_s1 + $0x1a8] sm:$0xff]  ;;  %v39_v46 = vld [vmem:[%s1513_s1 + $0xa0] sm:$0xff]  ;;  %v22_v48 = vld [vmem:[%s1513_s1 + $0x18] sm:$0xff] }
  0x11   :  { %386 = vmatpush.msra.mxu3 %v76_v27  ;;  %367 = vmatpush.msra.mxu2 %v59_v29  ;;  %v71_v47 = vld [vmem:[%s1513_s1 + $0x1a0] sm:$0xff]  ;;  %v54_v49 = vld [vmem:[%s1513_s1 + $0x118] sm:$0xff]  ;;  %v21_v52 = vld [vmem:[%s1513_s1 + $0x10] sm:$0xff] }
  0x12   :  { %347 = vmatpush.msra.mxu1 %v43_v30  ;;  %328 = vmatpush.msra.mxu0 %v26_v32  ;;  %v38_v50 = vld [vmem:[%s1513_s1 + $0x98] sm:$0xff]  ;;  %v53_v53 = vld [vmem:[%s1513_s1 + $0x110] sm:$0xff]  ;;  %v20_v56 = vld [vmem:[%s1513_s1 + $0x8] sm:$0xff] }
  0x13   :  { %387 = vmatpush.msra.mxu3 %v75_v31  ;;  %368 = vmatpush.msra.mxu2 %v58_v33  ;;  %v70_v51 = vld [vmem:[%s1513_s1 + $0x198] sm:$0xff]  ;;  %v37_v54 = vld [vmem:[%s1513_s1 + $0x90] sm:$0xff]  ;;  %v52_v57 = vld [vmem:[%s1513_s1 + $0x108] sm:$0xff] }
  0x14   :  { %348 = vmatpush.msra.mxu1 %v42_v34  ;;  %329 = vmatpush.msra.mxu0 %v25_v36  ;;  %v69_v55 = vld [vmem:[%s1513_s1 + $0x190] sm:$0xff]  ;;  %v36_v58 = vld [vmem:[%s1513_s1 + $0x88] sm:$0xff]  ;;  %v19_v60 = vld [vmem:[%s1513_s1] sm:$0xff] }
  0x15   :  { %388 = vmatpush.msra.mxu3 %v74_v35  ;;  %369 = vmatpush.msra.mxu2 %v57_v37  ;;  %v68_v59 = vld [vmem:[%s1513_s1 + $0x188] sm:$0xff]  ;;  %v51_v61 = vld [vmem:[%s1513_s1 + $0x100] sm:$0xff]  ;;  %v98_v62 = vld [vmem:[%s1513_s1 + $0x278] sm:$0xff] }
  0x16   :  { %349 = vmatpush.msra.mxu1 %v41_v38  ;;  %330 = vmatpush.msra.mxu0 %v24_v40  ;;  %v130_v63 = vld [vmem:[%s1513_s1 + $0x378] sm:$0xff]  ;;  %v35_v0 = vld [vmem:[%s1513_s1 + $0x80] sm:$0xff]  ;;  %v97_v2 = vld [vmem:[%s1513_s1 + $0x270] sm:$0xff] }
  0x17   :  { %389 = vmatpush.msra.mxu3 %v73_v39  ;;  %370 = vmatpush.msra.mxu2 %v56_v41  ;;  %v67_v1 = vld [vmem:[%s1513_s1 + $0x180] sm:$0xff]  ;;  %v114_v3 = vld [vmem:[%s1513_s1 + $0x2f8] sm:$0xff]  ;;  %v129_v4 = vld [vmem:[%s1513_s1 + $0x370] sm:$0xff] }
  0x18   :  { %350 = vmatpush.msra.mxu1 %v40_v42  ;;  %331 = vmatpush.msra.mxu0 %v23_v44  ;;  %v146_v5 = vld [vmem:[%s1513_s1 + $0x3f8] sm:$0xff]  ;;  %v96_v6 = vld [vmem:[%s1513_s1 + $0x268] sm:$0xff]  ;;  %v113_v7 = vld [vmem:[%s1513_s1 + $0x2f0] sm:$0xff] }
  0x19   :  { %390 = vmatpush.msra.mxu3 %v72_v43  ;;  %371 = vmatpush.msra.mxu2 %v55_v45  ;;  %v128_v8 = vld [vmem:[%s1513_s1 + $0x368] sm:$0xff]  ;;  %v145_v9 = vld [vmem:[%s1513_s1 + $0x3f0] sm:$0xff]  ;;  %v95_v10 = vld [vmem:[%s1513_s1 + $0x260] sm:$0xff] }
  0x1a   :  { %351 = vmatpush.msra.mxu1 %v39_v46  ;;  %332 = vmatpush.msra.mxu0 %v22_v48  ;;  %v112_v11 = vld [vmem:[%s1513_s1 + $0x2e8] sm:$0xff]  ;;  %v127_v12 = vld [vmem:[%s1513_s1 + $0x360] sm:$0xff]  ;;  %v94_v14 = vld [vmem:[%s1513_s1 + $0x258] sm:$0xff] }
  0x1b   :  { %391 = vmatpush.msra.mxu3 %v71_v47  ;;  %372 = vmatpush.msra.mxu2 %v54_v49  ;;  %v144_v13 = vld [vmem:[%s1513_s1 + $0x3e8] sm:$0xff]  ;;  %v111_v15 = vld [vmem:[%s1513_s1 + $0x2e0] sm:$0xff]  ;;  %v126_v16 = vld [vmem:[%s1513_s1 + $0x358] sm:$0xff] }
  0x1c   :  { %352 = vmatpush.msra.mxu1 %v38_v50  ;;  %333 = vmatpush.msra.mxu0 %v21_v52  ;;  %v143_v17 = vld [vmem:[%s1513_s1 + $0x3e0] sm:$0xff]  ;;  %v93_v18 = vld [vmem:[%s1513_s1 + $0x250] sm:$0xff]  ;;  %v110_v19 = vld [vmem:[%s1513_s1 + $0x2d8] sm:$0xff] }
  0x1d   :  { %392 = vmatpush.msra.mxu3 %v70_v51  ;;  %373 = vmatpush.msra.mxu2 %v53_v53  ;;  %v125_v20 = vld [vmem:[%s1513_s1 + $0x350] sm:$0xff]  ;;  %v142_v21 = vld [vmem:[%s1513_s1 + $0x3d8] sm:$0xff]  ;;  %v92_v22 = vld [vmem:[%s1513_s1 + $0x248] sm:$0xff] }
  0x1e   :  { %353 = vmatpush.msra.mxu1 %v37_v54  ;;  %334 = vmatpush.msra.mxu0 %v20_v56  ;;  %v109_v23 = vld [vmem:[%s1513_s1 + $0x2d0] sm:$0xff]  ;;  %v124_v24 = vld [vmem:[%s1513_s1 + $0x348] sm:$0xff]  ;;  %v15_v26 = vld [vmem:[%s1512_s0] sm:$0xff] }
  0x1f   :  { %393 = vmatpush.msra.mxu3 %v69_v55  ;;  %374 = vmatpush.msra.mxu2 %v52_v57  ;;  %v141_v25 = vld [vmem:[%s1513_s1 + $0x3d0] sm:$0xff]  ;;  %v91_v27 = vld [vmem:[%s1513_s1 + $0x240] sm:$0xff]  ;;  %v108_v28 = vld [vmem:[%s1513_s1 + $0x2c8] sm:$0xff]  ;;  %283 = vst [vmem:[#allocation1] ss:$4 sm:$0xff] %v15_v26 }
  0x20   :  { %354 = vmatpush.msra.mxu1 %v36_v58  ;;  %335 = vmatpush.msra.mxu0 %v19_v60  ;;  %v123_v29 = vld [vmem:[%s1513_s1 + $0x340] sm:$0xff]  ;;  %v140_v30 = vld [vmem:[%s1513_s1 + $0x3c8] sm:$0xff]  ;;  %v90_v31 = vld [vmem:[%s1513_s1 + $0x238] sm:$0xff] }
  0x21   :  { %394 = vmatpush.msra.mxu3 %v68_v59  ;;  %375 = vmatpush.msra.mxu2 %v51_v61  ;;  %v107_v32 = vld [vmem:[%s1513_s1 + $0x2c0] sm:$0xff]  ;;  %v122_v33 = vld [vmem:[%s1513_s1 + $0x338] sm:$0xff]  ;;  %v89_v35 = vld [vmem:[%s1513_s1 + $0x230] sm:$0xff] }
  0x22   :  { %400 = vmatpush.msrb.mxu0 %v98_v62  ;;  %355 = vmatpush.msra.mxu1 %v35_v0  ;;  %v139_v34 = vld [vmem:[%s1513_s1 + $0x3c0] sm:$0xff]  ;;  %v106_v36 = vld [vmem:[%s1513_s1 + $0x2b8] sm:$0xff]  ;;  %v121_v37 = vld [vmem:[%s1513_s1 + $0x330] sm:$0xff] }
  0x23   :  { %440 = vmatpush.msrb.mxu2 %v130_v63  ;;  %395 = vmatpush.msra.mxu3 %v67_v1  ;;  %v138_v38 = vld [vmem:[%s1513_s1 + $0x3b8] sm:$0xff]  ;;  %v88_v39 = vld [vmem:[%s1513_s1 + $0x228] sm:$0xff]  ;;  %v105_v40 = vld [vmem:[%s1513_s1 + $0x2b0] sm:$0xff] }
  0x24   :  { %401 = vmatpush.msrb.mxu0 %v97_v2  ;;  %420 = vmatpush.msrb.mxu1 %v114_v3  ;;  %v120_v41 = vld [vmem:[%s1513_s1 + $0x328] sm:$0xff]  ;;  %v137_v42 = vld [vmem:[%s1513_s1 + $0x3b0] sm:$0xff]  ;;  %v87_v44 = vld [vmem:[%s1513_s1 + $0x220] sm:$0xff] }
  0x25   :  { %441 = vmatpush.msrb.mxu2 %v129_v4  ;;  %460 = vmatpush.msrb.mxu3 %v146_v5  ;;  %v16_v43 = vld [vmem:[%s1512_s0 + $0x8] sm:$0xff]  ;;  %v17_v46 = vld [vmem:[%s1512_s0 + $0x10] sm:$0xff]  ;;  %v119_v47 = vld [vmem:[%s1513_s1 + $0x320] sm:$0xff] }
  0x26   :  { %402 = vmatpush.msrb.mxu0 %v96_v6  ;;  %421 = vmatpush.msrb.mxu1 %v113_v7  ;;  %v104_v45 = vld [vmem:[%s1513_s1 + $0x2a8] sm:$0xff]  ;;  %285 = vst [vmem:[#allocation1 + $0x20] ss:$4 sm:$0xff] %v16_v43  ;;  %v286_v48 = vld.sshfl [vmem:[#allocation1] sm:$0xff pattern:$0x73625140] }
  0x27   :  { %442 = vmatpush.msrb.mxu2 %v128_v8  ;;  %461 = vmatpush.msrb.mxu3 %v145_v9  ;;  %v288_v49 = vld.sshfl [vmem:[#allocation1 + $0x10] sm:$0xff pattern:$0x73625140]  ;;  %v1044_v50 = vld.sshfl [vmem:[#allocation1 + $0x8] sm:$0xff pattern:$0x73625140] }
  0x28   :  { %403 = vmatpush.msrb.mxu0 %v95_v10  ;;  %422 = vmatpush.msrb.mxu1 %v112_v11  ;;  %v1046_v51 = vld.sshfl [vmem:[#allocation1 + $0x18] sm:$0xff pattern:$0x73625140]  ;;  %v136_v52 = vld [vmem:[%s1513_s1 + $0x3a8] sm:$0xff]  ;;  %v103_v54 = vld [vmem:[%s1513_s1 + $0x2a0] sm:$0xff] }
  0x29   :  { %443 = vmatpush.msrb.mxu2 %v127_v12  ;;  %462 = vmatpush.msrb.mxu3 %v144_v13  ;;  %v86_v53 = vld [vmem:[%s1513_s1 + $0x218] sm:$0xff]  ;;  %294 = vst [vmem:[#allocation1] ss:$4 sm:$0xff] %v17_v46  ;;  %v135_v56 = vld [vmem:[%s1513_s1 + $0x3a0] sm:$0xff]  ;;  %v85_v57 = vld [vmem:[%s1513_s1 + $0x210] sm:$0xff] }
  0x2a   :  { %404 = vmatpush.msrb.mxu0 %v94_v14  ;;  %423 = vmatpush.msrb.mxu1 %v111_v15  ;;  %v118_v55 = vld [vmem:[%s1513_s1 + $0x318] sm:$0xff]  ;;  %v117_v59 = vld [vmem:[%s1513_s1 + $0x310] sm:$0xff]  ;;  %v84_v61 = vld [vmem:[%s1513_s1 + $0x208] sm:$0xff] }
  0x2b   :  { %444 = vmatpush.msrb.mxu2 %v126_v16  ;;  %463 = vmatpush.msrb.mxu3 %v143_v17  ;;  %v102_v58 = vld [vmem:[%s1513_s1 + $0x298] sm:$0xff]  ;;  %v101_v62 = vld [vmem:[%s1513_s1 + $0x290] sm:$0xff]  ;;  %v116_v4 = vld [vmem:[%s1513_s1 + $0x308] sm:$0xff] }
  0x2c   :  { %405 = vmatpush.msrb.mxu0 %v93_v18  ;;  %424 = vmatpush.msrb.mxu1 %v110_v19  ;;  %v134_v60 = vld [vmem:[%s1513_s1 + $0x398] sm:$0xff]  ;;  %v133_v5 = vld [vmem:[%s1513_s1 + $0x390] sm:$0xff]  ;;  %v83_v6 = vld [vmem:[%s1513_s1 + $0x200] sm:$0xff] }
  0x2d   :  { %445 = vmatpush.msrb.mxu2 %v125_v20  ;;  %464 = vmatpush.msrb.mxu3 %v142_v21  ;;  %v18_v63 = vld [vmem:[%s1512_s0 + $0x18] sm:$0xff]  ;;  %v1084_v0 = vld.sshfl [vmem:[#allocation1 + $0x30] sm:$0xff pattern:$0x73625140]  ;;  %v100_v7 = vld [vmem:[%s1513_s1 + $0x288] sm:$0xff] }
  0x2e   :  { %406 = vmatpush.msrb.mxu0 %v92_v22  ;;  %425 = vmatpush.msrb.mxu1 %v109_v23  ;;  %v1086_v1 = vld.sshfl [vmem:[#allocation1 + $0x20] sm:$0xff pattern:$0x73625140]  ;;  %v1088_v2 = vld.sshfl [vmem:[#allocation1 + $0x38] sm:$0xff pattern:$0x73625140] }
  0x2f   :  { %446 = vmatpush.msrb.mxu2 %v124_v24  ;;  %465 = vmatpush.msrb.mxu3 %v141_v25  ;;  %v1090_v3 = vld.sshfl [vmem:[#allocation1 + $0x28] sm:$0xff pattern:$0x73625140]  ;;  %v115_v8 = vld [vmem:[%s1513_s1 + $0x300] sm:$0xff]  ;;  %v162_v10 = vld [vmem:[%s1513_s1 + $0x478] sm:$0xff] }
  0x30   :  { %407 = vmatpush.msrb.mxu0 %v91_v27  ;;  %426 = vmatpush.msrb.mxu1 %v108_v28  ;;  %295 = vst [vmem:[#allocation1 + $0x20] ss:$4 sm:$0xff] %v18_v63  ;;  %v132_v9 = vld [vmem:[%s1513_s1 + $0x388] sm:$0xff]  ;;  %v194_v11 = vld [vmem:[%s1513_s1 + $0x578] sm:$0xff]  ;;  %v99_v12 = vld [vmem:[%s1513_s1 + $0x280] sm:$0xff] }
  0x31   :  { %447 = vmatpush.msrb.mxu2 %v123_v29  ;;  %466 = vmatpush.msrb.mxu3 %v140_v30  ;;  %v131_v13 = vld [vmem:[%s1513_s1 + $0x380] sm:$0xff]  ;;  %v161_v14 = vld [vmem:[%s1513_s1 + $0x470] sm:$0xff]  ;;  %v178_v15 = vld [vmem:[%s1513_s1 + $0x4f8] sm:$0xff] }
  0x32   :  { %408 = vmatpush.msrb.mxu0 %v90_v31  ;;  %427 = vmatpush.msrb.mxu1 %v107_v32  ;;  %v193_v16 = vld [vmem:[%s1513_s1 + $0x570] sm:$0xff]  ;;  %v210_v17 = vld [vmem:[%s1513_s1 + $0x5f8] sm:$0xff]  ;;  %v160_v18 = vld [vmem:[%s1513_s1 + $0x468] sm:$0xff] }
  0x33   :  { %448 = vmatpush.msrb.mxu2 %v122_v33  ;;  %467 = vmatpush.msrb.mxu3 %v139_v34  ;;  %v177_v19 = vld [vmem:[%s1513_s1 + $0x4f0] sm:$0xff]  ;;  %v192_v20 = vld [vmem:[%s1513_s1 + $0x568] sm:$0xff]  ;;  %v159_v22 = vld [vmem:[%s1513_s1 + $0x460] sm:$0xff] }
  0x34   :  { %409 = vmatpush.msrb.mxu0 %v89_v35  ;;  %428 = vmatpush.msrb.mxu1 %v106_v36  ;;  %v209_v21 = vld [vmem:[%s1513_s1 + $0x5f0] sm:$0xff]  ;;  %v176_v23 = vld [vmem:[%s1513_s1 + $0x4e8] sm:$0xff]  ;;  %v191_v24 = vld [vmem:[%s1513_s1 + $0x560] sm:$0xff] }
  0x35   :  { %449 = vmatpush.msrb.mxu2 %v121_v37  ;;  %468 = vmatpush.msrb.mxu3 %v138_v38  ;;  %v208_v25 = vld [vmem:[%s1513_s1 + $0x5e8] sm:$0xff]  ;;  %v158_v26 = vld [vmem:[%s1513_s1 + $0x458] sm:$0xff]  ;;  %v175_v27 = vld [vmem:[%s1513_s1 + $0x4e0] sm:$0xff] }
  0x36   :  { %410 = vmatpush.msrb.mxu0 %v88_v39  ;;  %429 = vmatpush.msrb.mxu1 %v105_v40  ;;  %v190_v28 = vld [vmem:[%s1513_s1 + $0x558] sm:$0xff]  ;;  %v207_v29 = vld [vmem:[%s1513_s1 + $0x5e0] sm:$0xff] }
  0x37   :  { %450 = vmatpush.msrb.mxu2 %v120_v41  ;;  %469 = vmatpush.msrb.mxu3 %v137_v42 }
  0x38   :  { %411 = vmatpush.msrb.mxu0 %v87_v44  ;;  %430 = vmatpush.msrb.mxu1 %v104_v45 }
  0x39   :  { %451 = vmatpush.msrb.mxu2 %v119_v47  ;;  %470 = vmatpush.msrb.mxu3 %v136_v52 }
  0x3a   :  { %412 = vmatpush.msrb.mxu0 %v86_v53  ;;  %431 = vmatpush.msrb.mxu1 %v103_v54 }
  0x3b   :  { %452 = vmatpush.msrb.mxu2 %v118_v55  ;;  %471 = vmatpush.msrb.mxu3 %v135_v56 }
  0x3c   :  { %413 = vmatpush.msrb.mxu0 %v85_v57  ;;  %432 = vmatpush.msrb.mxu1 %v102_v58 }
  0x3d   :  { %453 = vmatpush.msrb.mxu2 %v117_v59  ;;  %472 = vmatpush.msrb.mxu3 %v134_v60 }
  0x3e   :  { %414 = vmatpush.msrb.mxu0 %v84_v61  ;;  %433 = vmatpush.msrb.mxu1 %v101_v62 }
  0x3f   :  { %454 = vmatpush.msrb.mxu2 %v116_v4  ;;  %473 = vmatpush.msrb.mxu3 %v133_v5 }
  0x40   :  { %415 = vmatpush.msrb.mxu0 %v83_v6  ;;  %434 = vmatpush.msrb.mxu1 %v100_v7 }
  0x41   :  { %455 = vmatpush.msrb.mxu2 %v115_v8  ;;  %474 = vmatpush.msrb.mxu3 %v132_v9 }
  0x42   :  { %336 = vmatmul.f32.vlgmr.msra.gmra.mxu0 %v286_v48  ;;  %376 = vmatmul.f32.vlgmr.msra.gmra.mxu2 %v288_v49 }
  0x43   :  { %480 = vmatpush.msra.mxu0 %v162_v10  ;;  %520 = vmatpush.msra.mxu2 %v194_v11 }
  0x44   :  { %435 = vmatpush.msrb.mxu1 %v99_v12  ;;  %475 = vmatpush.msrb.mxu3 %v131_v13 }
  0x45   :  { %356 = vmatmul.f32.vlgmr.msra.gmra.mxu1 %v1044_v50  ;;  %396 = vmatmul.f32.vlgmr.msra.gmra.mxu3 %v1046_v51 }
  0x46   :  { %481 = vmatpush.msra.mxu0 %v161_v14  ;;  %500 = vmatpush.msra.mxu1 %v178_v15 }
  0x47   :  { %521 = vmatpush.msra.mxu2 %v193_v16  ;;  %540 = vmatpush.msra.mxu3 %v210_v17 }
  0x48   :  { %482 = vmatpush.msra.mxu0 %v160_v18  ;;  %501 = vmatpush.msra.mxu1 %v177_v19 }
  0x49   :  { %522 = vmatpush.msra.mxu2 %v192_v20  ;;  %541 = vmatpush.msra.mxu3 %v209_v21 }
  0x4a   :  { %483 = vmatpush.msra.mxu0 %v159_v22  ;;  %502 = vmatpush.msra.mxu1 %v176_v23 }
  0x4b   :  { %523 = vmatpush.msra.mxu2 %v191_v24  ;;  %542 = vmatpush.msra.mxu3 %v208_v25 }
  0x4c   :  { %8 = vsyncpa [#allocation3], 0  ;;  %456 = vmatmul.f32.vlgmr.msrb.gmra.mxu2 %v1084_v0  ;;  %484 = vmatpush.msra.mxu0 %v158_v26  ;;  %v157_v30 = vld [vmem:[%s1513_s1 + $0x450] sm:$0xff]  ;;  %v174_v31 = vld [vmem:[%s1513_s1 + $0x4d8] sm:$0xff]  ;;  %s650_s13 = sshll.u32 %s1515_s3, 4  ;;  %vm641_vm0 = vcmask 123904   ;;  %s651_s13 = int_to_ptr.hbm [resolvable:$true] %s650_s13 }
  0x4d   :  { %503 = vmatpush.msra.mxu1 %v175_v27  ;;  %524 = vmatpush.msra.mxu2 %v190_v28  ;;  %v189_v32 = vld [vmem:[%s1513_s1 + $0x550] sm:$0xff]  ;;  %v206_v33 = vld [vmem:[%s1513_s1 + $0x5d8] sm:$0xff]  ;;  %v156_v34 = vld [vmem:[%s1513_s1 + $0x448] sm:$0xff] }
  0x4e   :  { %543 = vmatpush.msra.mxu3 %v207_v29  ;;  %416 = vmatmul.f32.vlgmr.msrb.gmra.mxu0 %v1086_v1  ;;  %v173_v35 = vld [vmem:[%s1513_s1 + $0x4d0] sm:$0xff]  ;;  %v188_v36 = vld [vmem:[%s1513_s1 + $0x548] sm:$0xff]  ;;  %v155_v38 = vld [vmem:[%s1513_s1 + $0x440] sm:$0xff] }
  0x4f   :  { %476 = vmatmul.f32.vlgmr.msrb.gmra.mxu3 %v1088_v2  ;;  %485 = vmatpush.msra.mxu0 %v157_v30  ;;  %v205_v37 = vld [vmem:[%s1513_s1 + $0x5d0] sm:$0xff]  ;;  %v172_v39 = vld [vmem:[%s1513_s1 + $0x4c8] sm:$0xff]  ;;  %v187_v40 = vld [vmem:[%s1513_s1 + $0x540] sm:$0xff] }
  0x50   :  { %504 = vmatpush.msra.mxu1 %v174_v31  ;;  %525 = vmatpush.msra.mxu2 %v189_v32  ;;  %v204_v41 = vld [vmem:[%s1513_s1 + $0x5c8] sm:$0xff]  ;;  %v154_v42 = vld [vmem:[%s1513_s1 + $0x438] sm:$0xff]  ;;  %v171_v43 = vld [vmem:[%s1513_s1 + $0x4c0] sm:$0xff] }
  0x51   :  { %544 = vmatpush.msra.mxu3 %v206_v33  ;;  %436 = vmatmul.f32.vlgmr.msrb.gmra.mxu1 %v1090_v3  ;;  %v186_v44 = vld [vmem:[%s1513_s1 + $0x538] sm:$0xff]  ;;  %v203_v45 = vld [vmem:[%s1513_s1 + $0x5c0] sm:$0xff]  ;;  %v153_v46 = vld [vmem:[%s1513_s1 + $0x430] sm:$0xff] }
  0x52   :  { %486 = vmatpush.msra.mxu0 %v156_v34  ;;  %505 = vmatpush.msra.mxu1 %v173_v35  ;;  %v170_v47 = vld [vmem:[%s1513_s1 + $0x4b8] sm:$0xff]  ;;  %v185_v48 = vld [vmem:[%s1513_s1 + $0x530] sm:$0xff]  ;;  %v152_v50 = vld [vmem:[%s1513_s1 + $0x428] sm:$0xff] }
  0x53   :  { %526 = vmatpush.msra.mxu2 %v188_v36  ;;  %545 = vmatpush.msra.mxu3 %v205_v37  ;;  %v202_v49 = vld [vmem:[%s1513_s1 + $0x5b8] sm:$0xff]  ;;  %v169_v51 = vld [vmem:[%s1513_s1 + $0x4b0] sm:$0xff]  ;;  %v184_v52 = vld [vmem:[%s1513_s1 + $0x528] sm:$0xff] }
  0x54   :  { %487 = vmatpush.msra.mxu0 %v155_v38  ;;  %506 = vmatpush.msra.mxu1 %v172_v39  ;;  %v201_v53 = vld [vmem:[%s1513_s1 + $0x5b0] sm:$0xff]  ;;  %v151_v54 = vld [vmem:[%s1513_s1 + $0x420] sm:$0xff]  ;;  %v168_v55 = vld [vmem:[%s1513_s1 + $0x4a8] sm:$0xff] }
  0x55   :  { %527 = vmatpush.msra.mxu2 %v187_v40  ;;  %546 = vmatpush.msra.mxu3 %v204_v41  ;;  %v183_v56 = vld [vmem:[%s1513_s1 + $0x520] sm:$0xff]  ;;  %v200_v57 = vld [vmem:[%s1513_s1 + $0x5a8] sm:$0xff]  ;;  %v150_v58 = vld [vmem:[%s1513_s1 + $0x418] sm:$0xff] }
  0x56   :  { %488 = vmatpush.msra.mxu0 %v154_v42  ;;  %507 = vmatpush.msra.mxu1 %v171_v43  ;;  %v167_v59 = vld [vmem:[%s1513_s1 + $0x4a0] sm:$0xff]  ;;  %v182_v60 = vld [vmem:[%s1513_s1 + $0x518] sm:$0xff]  ;;  %v149_v62 = vld [vmem:[%s1513_s1 + $0x410] sm:$0xff] }
  0x57   :  { %528 = vmatpush.msra.mxu2 %v186_v44  ;;  %547 = vmatpush.msra.mxu3 %v203_v45  ;;  %v199_v61 = vld [vmem:[%s1513_s1 + $0x5a0] sm:$0xff]  ;;  %v166_v63 = vld [vmem:[%s1513_s1 + $0x498] sm:$0xff]  ;;  %v181_v0 = vld [vmem:[%s1513_s1 + $0x510] sm:$0xff] }
  0x58   :  { %489 = vmatpush.msra.mxu0 %v153_v46  ;;  %508 = vmatpush.msra.mxu1 %v170_v47  ;;  %v198_v1 = vld [vmem:[%s1513_s1 + $0x598] sm:$0xff]  ;;  %v148_v2 = vld [vmem:[%s1513_s1 + $0x408] sm:$0xff]  ;;  %v165_v3 = vld [vmem:[%s1513_s1 + $0x490] sm:$0xff] }
  0x59   :  { %529 = vmatpush.msra.mxu2 %v185_v48  ;;  %548 = vmatpush.msra.mxu3 %v202_v49  ;;  %v180_v4 = vld [vmem:[%s1513_s1 + $0x508] sm:$0xff]  ;;  %v197_v5 = vld [vmem:[%s1513_s1 + $0x590] sm:$0xff]  ;;  %v147_v6 = vld [vmem:[%s1513_s1 + $0x400] sm:$0xff] }
  0x5a   :  { %490 = vmatpush.msra.mxu0 %v152_v50  ;;  %509 = vmatpush.msra.mxu1 %v169_v51  ;;  %v164_v7 = vld [vmem:[%s1513_s1 + $0x488] sm:$0xff]  ;;  %v179_v8 = vld [vmem:[%s1513_s1 + $0x500] sm:$0xff]  ;;  %v298_v11 = vld.sshfl [vmem:[#allocation1 + $0x10] sm:$0xff pattern:$0x73625140] }
  0x5b   :  { %530 = vmatpush.msra.mxu2 %v184_v52  ;;  %549 = vmatpush.msra.mxu3 %v201_v53  ;;  %v196_v9 = vld [vmem:[%s1513_s1 + $0x588] sm:$0xff]  ;;  %v296_v10 = vld.sshfl [vmem:[#allocation1] sm:$0xff pattern:$0x73625140]  ;;  %v226_v12 = vld [vmem:[%s1513_s1 + $0x678] sm:$0xff] }
  0x5c   :  { %491 = vmatpush.msra.mxu0 %v151_v54  ;;  %510 = vmatpush.msra.mxu1 %v168_v55  ;;  %v258_v13 = vld [vmem:[%s1513_s1 + $0x778] sm:$0xff]  ;;  %v163_v14 = vld [vmem:[%s1513_s1 + $0x480] sm:$0xff]  ;;  %v297_v16 = vld.sshfl [vmem:[#allocation1 + $0x8] sm:$0xff pattern:$0x73625140] }
  0x5d   :  { %531 = vmatpush.msra.mxu2 %v183_v56  ;;  %550 = vmatpush.msra.mxu3 %v200_v57  ;;  %v195_v15 = vld [vmem:[%s1513_s1 + $0x580] sm:$0xff]  ;;  %v299_v17 = vld.sshfl [vmem:[#allocation1 + $0x18] sm:$0xff pattern:$0x73625140]  ;;  %v225_v18 = vld [vmem:[%s1513_s1 + $0x670] sm:$0xff] }
  0x5e   :  { %492 = vmatpush.msra.mxu0 %v150_v58  ;;  %511 = vmatpush.msra.mxu1 %v167_v59  ;;  %v242_v19 = vld [vmem:[%s1513_s1 + $0x6f8] sm:$0xff]  ;;  %v257_v20 = vld [vmem:[%s1513_s1 + $0x770] sm:$0xff]  ;;  %v224_v22 = vld [vmem:[%s1513_s1 + $0x668] sm:$0xff] }
  0x5f   :  { %532 = vmatpush.msra.mxu2 %v182_v60  ;;  %551 = vmatpush.msra.mxu3 %v199_v61  ;;  %v274_v21 = vld [vmem:[%s1513_s1 + $0x7f8] sm:$0xff]  ;;  %v241_v23 = vld [vmem:[%s1513_s1 + $0x6f0] sm:$0xff]  ;;  %v256_v24 = vld [vmem:[%s1513_s1 + $0x768] sm:$0xff] }
  0x60   :  { %493 = vmatpush.msra.mxu0 %v149_v62  ;;  %512 = vmatpush.msra.mxu1 %v166_v63  ;;  %v273_v25 = vld [vmem:[%s1513_s1 + $0x7f0] sm:$0xff]  ;;  %v223_v26 = vld [vmem:[%s1513_s1 + $0x660] sm:$0xff]  ;;  %v240_v27 = vld [vmem:[%s1513_s1 + $0x6e8] sm:$0xff] }
  0x61   :  { %533 = vmatpush.msra.mxu2 %v181_v0  ;;  %552 = vmatpush.msra.mxu3 %v198_v1  ;;  %v255_v28 = vld [vmem:[%s1513_s1 + $0x760] sm:$0xff]  ;;  %v272_v29 = vld [vmem:[%s1513_s1 + $0x7e8] sm:$0xff]  ;;  %v222_v30 = vld [vmem:[%s1513_s1 + $0x658] sm:$0xff] }
  0x62   :  { %494 = vmatpush.msra.mxu0 %v148_v2  ;;  %513 = vmatpush.msra.mxu1 %v165_v3  ;;  %v239_v31 = vld [vmem:[%s1513_s1 + $0x6e0] sm:$0xff]  ;;  %v254_v32 = vld [vmem:[%s1513_s1 + $0x758] sm:$0xff]  ;;  %v221_v34 = vld [vmem:[%s1513_s1 + $0x650] sm:$0xff] }
  0x63   :  { %534 = vmatpush.msra.mxu2 %v180_v4  ;;  %553 = vmatpush.msra.mxu3 %v197_v5  ;;  %v271_v33 = vld [vmem:[%s1513_s1 + $0x7e0] sm:$0xff]  ;;  %v238_v35 = vld [vmem:[%s1513_s1 + $0x6d8] sm:$0xff]  ;;  %v253_v36 = vld [vmem:[%s1513_s1 + $0x750] sm:$0xff] }
  0x64   :  { %495 = vmatpush.msra.mxu0 %v147_v6  ;;  %514 = vmatpush.msra.mxu1 %v164_v7  ;;  %v270_v37 = vld [vmem:[%s1513_s1 + $0x7d8] sm:$0xff]  ;;  %v220_v38 = vld [vmem:[%s1513_s1 + $0x648] sm:$0xff]  ;;  %v237_v39 = vld [vmem:[%s1513_s1 + $0x6d0] sm:$0xff] }
  0x65   :  { %535 = vmatpush.msra.mxu2 %v179_v8  ;;  %554 = vmatpush.msra.mxu3 %v196_v9  ;;  %v252_v40 = vld [vmem:[%s1513_s1 + $0x748] sm:$0xff]  ;;  %v269_v41 = vld [vmem:[%s1513_s1 + $0x7d0] sm:$0xff]  ;;  %v219_v42 = vld [vmem:[%s1513_s1 + $0x640] sm:$0xff] }
  0x66   :  { %496 = vmatmul.f32.vlgmr.msra.gmra.mxu0 %v296_v10  ;;  %536 = vmatmul.f32.vlgmr.msra.gmra.mxu2 %v298_v11  ;;  %v236_v43 = vld [vmem:[%s1513_s1 + $0x6c8] sm:$0xff]  ;;  %v251_v44 = vld [vmem:[%s1513_s1 + $0x740] sm:$0xff]  ;;  %v218_v46 = vld [vmem:[%s1513_s1 + $0x638] sm:$0xff] }
  0x67   :  { %560 = vmatpush.msrb.mxu0 %v226_v12  ;;  %600 = vmatpush.msrb.mxu2 %v258_v13  ;;  %v268_v45 = vld [vmem:[%s1513_s1 + $0x7c8] sm:$0xff]  ;;  %v235_v47 = vld [vmem:[%s1513_s1 + $0x6c0] sm:$0xff]  ;;  %v250_v48 = vld [vmem:[%s1513_s1 + $0x738] sm:$0xff] }
  0x68   :  { %515 = vmatpush.msra.mxu1 %v163_v14  ;;  %555 = vmatpush.msra.mxu3 %v195_v15  ;;  %v267_v49 = vld [vmem:[%s1513_s1 + $0x7c0] sm:$0xff]  ;;  %v217_v50 = vld [vmem:[%s1513_s1 + $0x630] sm:$0xff]  ;;  %v234_v51 = vld [vmem:[%s1513_s1 + $0x6b8] sm:$0xff] }
  0x69   :  { %516 = vmatmul.f32.vlgmr.msra.gmra.mxu1 %v297_v16  ;;  %556 = vmatmul.f32.vlgmr.msra.gmra.mxu3 %v299_v17  ;;  %v249_v52 = vld [vmem:[%s1513_s1 + $0x730] sm:$0xff]  ;;  %v266_v53 = vld [vmem:[%s1513_s1 + $0x7b8] sm:$0xff]  ;;  %v216_v54 = vld [vmem:[%s1513_s1 + $0x628] sm:$0xff] }
  0x6a   :  { %561 = vmatpush.msrb.mxu0 %v225_v18  ;;  %580 = vmatpush.msrb.mxu1 %v242_v19  ;;  %v233_v55 = vld [vmem:[%s1513_s1 + $0x6b0] sm:$0xff]  ;;  %v248_v56 = vld [vmem:[%s1513_s1 + $0x728] sm:$0xff]  ;;  %v215_v58 = vld [vmem:[%s1513_s1 + $0x620] sm:$0xff] }
  0x6b   :  { %601 = vmatpush.msrb.mxu2 %v257_v20  ;;  %620 = vmatpush.msrb.mxu3 %v274_v21  ;;  %v265_v57 = vld [vmem:[%s1513_s1 + $0x7b0] sm:$0xff]  ;;  %v232_v59 = vld [vmem:[%s1513_s1 + $0x6a8] sm:$0xff]  ;;  %v247_v60 = vld [vmem:[%s1513_s1 + $0x720] sm:$0xff] }
  0x6c   :  { %562 = vmatpush.msrb.mxu0 %v224_v22  ;;  %581 = vmatpush.msrb.mxu1 %v241_v23  ;;  %v264_v61 = vld [vmem:[%s1513_s1 + $0x7a8] sm:$0xff]  ;;  %v214_v62 = vld [vmem:[%s1513_s1 + $0x618] sm:$0xff]  ;;  %v231_v63 = vld [vmem:[%s1513_s1 + $0x6a0] sm:$0xff] }
  0x6d   :  { %602 = vmatpush.msrb.mxu2 %v256_v24  ;;  %621 = vmatpush.msrb.mxu3 %v273_v25  ;;  %v246_v0 = vld [vmem:[%s1513_s1 + $0x718] sm:$0xff]  ;;  %v263_v1 = vld [vmem:[%s1513_s1 + $0x7a0] sm:$0xff]  ;;  %v213_v2 = vld [vmem:[%s1513_s1 + $0x610] sm:$0xff] }
  0x6e   :  { %563 = vmatpush.msrb.mxu0 %v223_v26  ;;  %582 = vmatpush.msrb.mxu1 %v240_v27  ;;  %v230_v3 = vld [vmem:[%s1513_s1 + $0x698] sm:$0xff]  ;;  %v245_v4 = vld [vmem:[%s1513_s1 + $0x710] sm:$0xff]  ;;  %v212_v6 = vld [vmem:[%s1513_s1 + $0x608] sm:$0xff] }
  0x6f   :  { %603 = vmatpush.msrb.mxu2 %v255_v28  ;;  %622 = vmatpush.msrb.mxu3 %v272_v29  ;;  %v262_v5 = vld [vmem:[%s1513_s1 + $0x798] sm:$0xff]  ;;  %v229_v7 = vld [vmem:[%s1513_s1 + $0x690] sm:$0xff]  ;;  %v244_v8 = vld [vmem:[%s1513_s1 + $0x708] sm:$0xff] }
  0x70   :  { %564 = vmatpush.msrb.mxu0 %v222_v30  ;;  %583 = vmatpush.msrb.mxu1 %v239_v31  ;;  %v261_v9 = vld [vmem:[%s1513_s1 + $0x790] sm:$0xff]  ;;  %v211_v10 = vld [vmem:[%s1513_s1 + $0x600] sm:$0xff]  ;;  %v228_v11 = vld [vmem:[%s1513_s1 + $0x688] sm:$0xff] }
  0x71   :  { %604 = vmatpush.msrb.mxu2 %v254_v32  ;;  %623 = vmatpush.msrb.mxu3 %v271_v33  ;;  %v243_v12 = vld [vmem:[%s1513_s1 + $0x700] sm:$0xff]  ;;  %v260_v13 = vld [vmem:[%s1513_s1 + $0x788] sm:$0xff]  ;;  %v302_v15 = vld.sshfl [vmem:[#allocation1 + $0x30] sm:$0xff pattern:$0x73625140] }
  0x72   :  { %565 = vmatpush.msrb.mxu0 %v221_v34  ;;  %584 = vmatpush.msrb.mxu1 %v238_v35  ;;  %v300_v14 = vld.sshfl [vmem:[#allocation1 + $0x20] sm:$0xff pattern:$0x73625140]  ;;  %v301_v18 = vld.sshfl [vmem:[#allocation1 + $0x28] sm:$0xff pattern:$0x73625140] }
  0x73   :  { %605 = vmatpush.msrb.mxu2 %v253_v36  ;;  %624 = vmatpush.msrb.mxu3 %v270_v37  ;;  %v227_v16 = vld [vmem:[%s1513_s1 + $0x680] sm:$0xff]  ;;  %v303_v19 = vld.sshfl [vmem:[#allocation1 + $0x38] sm:$0xff pattern:$0x73625140] }
  0x74   :  { %566 = vmatpush.msrb.mxu0 %v220_v38  ;;  %585 = vmatpush.msrb.mxu1 %v237_v39  ;;  %v259_v17 = vld [vmem:[%s1513_s1 + $0x780] sm:$0xff]  ;;  %s687_s1 = smov [#allocation2]  }
  0x75   :  { %606 = vmatpush.msrb.mxu2 %v252_v40  ;;  %625 = vmatpush.msrb.mxu3 %v269_v41  ;;  %v660_v20 = vld [vmem:[%s1514_s2] ss:$0 sm:$0xff]  ;;  %s648_s2 = sshll.u32 %s687_s1, 4  ;;  %s649_s2 = int_to_ptr.vmem [resolvable:$true] %s648_s2 }
  0x76   :  { %567 = vmatpush.msrb.mxu0 %v219_v42  ;;  %586 = vmatpush.msrb.mxu1 %v236_v43 }
  0x77   :  { %607 = vmatpush.msrb.mxu2 %v251_v44  ;;  %626 = vmatpush.msrb.mxu3 %v268_v45 }
  0x78   :  { %568 = vmatpush.msrb.mxu0 %v218_v46  ;;  %587 = vmatpush.msrb.mxu1 %v235_v47 }
  0x79   :  { %608 = vmatpush.msrb.mxu2 %v250_v48  ;;  %627 = vmatpush.msrb.mxu3 %v267_v49 }
  0x7a   :  { %569 = vmatpush.msrb.mxu0 %v217_v50  ;;  %588 = vmatpush.msrb.mxu1 %v234_v51 }
  0x7b   :  { %609 = vmatpush.msrb.mxu2 %v249_v52  ;;  %628 = vmatpush.msrb.mxu3 %v266_v53 }
  0x7c   :  { %570 = vmatpush.msrb.mxu0 %v216_v54  ;;  %589 = vmatpush.msrb.mxu1 %v233_v55 }
  0x7d   :  { %610 = vmatpush.msrb.mxu2 %v248_v56  ;;  %629 = vmatpush.msrb.mxu3 %v265_v57 }
  0x7e   :  { %571 = vmatpush.msrb.mxu0 %v215_v58  ;;  %590 = vmatpush.msrb.mxu1 %v232_v59 }
  0x7f   :  { %611 = vmatpush.msrb.mxu2 %v247_v60  ;;  %630 = vmatpush.msrb.mxu3 %v264_v61 }
  0x80   :  { %572 = vmatpush.msrb.mxu0 %v214_v62  ;;  %591 = vmatpush.msrb.mxu1 %v231_v63 }
  0x81   :  { %612 = vmatpush.msrb.mxu2 %v246_v0  ;;  %631 = vmatpush.msrb.mxu3 %v263_v1 }
  0x82   :  { %573 = vmatpush.msrb.mxu0 %v213_v2  ;;  %592 = vmatpush.msrb.mxu1 %v230_v3 }
  0x83   :  { %613 = vmatpush.msrb.mxu2 %v245_v4  ;;  %632 = vmatpush.msrb.mxu3 %v262_v5 }
  0x84   :  { %574 = vmatpush.msrb.mxu0 %v212_v6  ;;  %593 = vmatpush.msrb.mxu1 %v229_v7 }
  0x85   :  { %614 = vmatpush.msrb.mxu2 %v244_v8  ;;  %633 = vmatpush.msrb.mxu3 %v261_v9 }
  0x86   :  { %575 = vmatpush.msrb.mxu0 %v211_v10  ;;  %594 = vmatpush.msrb.mxu1 %v228_v11 }
  0x87   :  { %615 = vmatpush.msrb.mxu2 %v243_v12  ;;  %634 = vmatpush.msrb.mxu3 %v260_v13 }
  0x88   :  { %576 = vmatmul.f32.vlgmr.msrb.gmra.mxu0 %v300_v14  ;;  %616 = vmatmul.f32.vlgmr.msrb.gmra.mxu2 %v302_v15 }
  0x89   :  { %595 = vmatpush.msrb.mxu1 %v227_v16  ;;  %635 = vmatpush.msrb.mxu3 %v259_v17 }
  0x8a   :  { %596 = vmatmul.f32.vlgmr.msrb.gmra.mxu1 %v301_v18  ;;  %636 = vmatmul.f32.vlgmr.msrb.gmra.mxu3 %v303_v19 }
  0xbf   :  { %v337_v21 = vpop.f32.mrf.mxu0 }
  0xc0   :  { %v338_v22 = vadd.f32 %v660_v20, %v337_v21 }
  0xc2   :  { %v357_v23 = vpop.f32.mrf.mxu1 }
  0xc3   :  { %v358_v24 = vadd.f32 %v357_v23, %v338_v22 }
  0xc5   :  { %v377_v25 = vpop.f32.mrf.mxu2 }
  0xc6   :  { %v378_v26 = vadd.f32 %v377_v25, %v358_v24 }
  0xc8   :  { %v397_v27 = vpop.f32.mrf.mxu3 }
  0xc9   :  { %v398_v28 = vadd.f32 %v397_v27, %v378_v26 }
  0xcb   :  { %v417_v29 = vpop.f32.mrf.mxu0 }
  0xcc   :  { %v418_v30 = vadd.f32 %v417_v29, %v398_v28 }
  0xce   :  { %v437_v31 = vpop.f32.mrf.mxu1 }
  0xcf   :  { %v438_v32 = vadd.f32 %v437_v31, %v418_v30  ;;  %v457_v33 = vpop.f32.mrf.mxu2 }
  0xd1   :  { %v458_v34 = vadd.f32 %v457_v33, %v438_v32 }
  0xd2   :  { %v477_v35 = vpop.f32.mrf.mxu3 }
  0xd3   :  { %v478_v37 = vadd.f32 %v477_v35, %v458_v34 }
  0xe3   :  { %v497_v36 = vpop.f32.mrf.mxu0 }
  0xe4   :  { %v498_v38 = vadd.f32 %v497_v36, %v478_v37 }
  0xe6   :  { %v517_v39 = vpop.f32.mrf.mxu1 }
  0xe7   :  { %v518_v41 = vadd.f32 %v517_v39, %v498_v38 }
  0xe9   :  { %v537_v40 = vpop.f32.mrf.mxu2 }
  0xea   :  { %v538_v42 = vadd.f32 %v537_v40, %v518_v41 }
  0xec   :  { %v557_v43 = vpop.f32.mrf.mxu3 }
  0xed   :  { %v558_v44 = vadd.f32 %v557_v43, %v538_v42 }
 0x105   :  { %v577_v45 = vpop.f32.mrf.mxu0 }
 0x106   :  { %v578_v46 = vadd.f32 %v577_v45, %v558_v44 }
 0x107   :  { %v597_v47 = vpop.f32.mrf.mxu1 }
 0x108   :  { %v598_v48 = vadd.f32 %v597_v47, %v578_v46 }
 0x10b   :  { %v617_v49 = vpop.f32.mrf.mxu2 }
 0x10c   :  { %v618_v50 = vadd.f32 %v617_v49, %v598_v48 }
 0x10d   :  { %v637_v51 = vpop.f32.mrf.mxu3 }
 0x10e   :  { %v638_v52 = vadd.f32 %v637_v51, %v618_v50 }
 0x110   :  { %v640_v53 = vmax.f32 %v638_v52, 0.0 }
 0x112   :  { %642 = vst.msk [vmem:[#allocation2] sm:$0x3] %vm641_vm0, %v640_v53 }
 0x113   :  { %653 = dma.vmem_to_hbm [thread:$0]  %s649_s2, 32, %s651_s13, [#allocation3]  }
 0x114   :  { %685 = dma.done.wait [#allocation3], 32  }
 0x115   :  { %686 = vsyncadd [#allocation3], 4294967264 }
 0x116   :  { %658 = vsyncpa [#allocation3], 1 }

</bundles_post_ra>
